<compile_context>
chip_gen: v7x
topology: tpu7x:2x2x1
jax: 0.10.0
libtpu: 0.0.40
codegen_flags: <defaults>
</compile_context>

<pallas_src>
import numpy as np
import jax
import jax.numpy as jnp
from jax.experimental import pallas as pl
from jax.experimental.pallas import tpu as pltpu


def _round_up(x, m):
    return ((x + m - 1) // m) * m


def solver_init_params(p):
    """Deterministic parameter init, exactly as SovlerInitNet.__init__."""
    hidden = p * p + 2 * p
    l1 = np.zeros((hidden, 2 * p), dtype=np.float32)
    l2 = np.zeros((p, hidden), dtype=np.float32)
    for i in range(p):
        for j in range(p):
            l1[i + p * j][i] = 1.0
            l1[i + p * j][p + j] = 1.0
    for i in range(2 * p):
        l1[p * p + i][i] = 1.0
    for outp in range(p):
        for i in range(p):
            j = (outp - i) % p
            l2[outp][i * p + j] = 1.0
            l2[outp][p * p + i] = -1.0
            l2[outp][p * p + p + j] = -1.0
    return jnp.asarray(l1), jnp.asarray(l2)


_TILE_N_TARGET = 512    # batch-tile target (rows), multiple of 8
_TILE_H_TARGET = 2048   # hidden-tile target (fallback path), multiple of 128


def _vmem_capacity_bytes():
    """Physical per-TensorCore VMEM (64 MiB on v7x, 128 MiB on v5e/v6e)."""
    try:
        return int(pltpu.get_tpu_info().vmem_capacity_bytes)
    except Exception:
        return 64 << 20   # conservative: v7x per-core VMEM


def prepare_weights(layer1, layer2):
    """One-time weight prep (hoisted out of the per-call path).

    * Transposes to row-major matmul layout.
    * Folds the module's trailing `/ 2` into layer2 (values become +-0.5).
    * Zero-pads hidden and p (lane dims) to multiples of 128; the padding is
      mathematically exact (zeros contribute exactly zero).
    * Stores in bf16: all values are in {-1,-0.5,0,0.5,1}, so the narrow
      HBM/VMEM representation is lossless.
    """
    hidden, two_p = layer1.shape
    p = layer2.shape[0]
    h_pad = _round_up(hidden, 128)
    p_pad = _round_up(p, 128)

    w1t = (jnp.zeros((two_p, h_pad), jnp.bfloat16)
           .at[:, :hidden].set(layer1.T.astype(jnp.bfloat16)))
    w2t = (jnp.zeros((h_pad, p_pad), jnp.bfloat16)
           .at[:hidden, :p].set((layer2.T * 0.5).astype(jnp.bfloat16)))

    meta = dict(p=p, two_p=two_p, hidden=hidden, h_pad=h_pad, p_pad=p_pad)
    return w1t, w2t, meta


def _resident_kernel(x_ref, w1t_ref, w2t_ref, o_ref):
    """Grid: (N tiles,).  Weights are full, VMEM-resident blocks (DMA'd once)."""
    w1 = w1t_ref[...].astype(jnp.float32)                 # (2p, h_pad)
    h = jnp.dot(x_ref[...], w1, preferred_element_type=jnp.float32)
    h = h * h                                             # f32 square on the VPU
    w2 = w2t_ref[...].astype(jnp.float32)                 # (h_pad, p_pad), 0.5 folded in
    o_ref[...] = jnp.dot(h, w2, preferred_element_type=jnp.float32)


def _tiled_kernel(x_ref, w1t_ref, w2t_ref, o_ref, acc_ref):
    """Grid: (hidden tiles [OUTER], N tiles [inner]).

    With the reduction axis outer, each weight slab's block index is constant
    across the inner batch sweep, so weights are DMA'd exactly once per call.
    Partial products accumulate in a persistent f32 VMEM scratch indexed by
    the batch-tile id; the output block is written on the last hidden step.
    """
    k = pl.program_id(0)
    i = pl.program_id(1)

    w1 = w1t_ref[...].astype(jnp.float32)                 # (2p, tile_h)
    h = jnp.dot(x_ref[...], w1, preferred_element_type=jnp.float32)
    h = h * h
    w2 = w2t_ref[...].astype(jnp.float32)                 # (tile_h, p_pad)
    contrib = jnp.dot(h, w2, preferred_element_type=jnp.float32)

    @pl.when(k == 0)
    def _():
        acc_ref[i] = contrib

    @pl.when(k > 0)
    def _():
        acc_ref[i] += contrib

    @pl.when(k == pl.num_programs(0) - 1)
    def _():
        o_ref[...] = acc_ref[i]


def solver_init_net_forward(x, w1t, w2t, meta, *, force_tiled=False):
    """JAX wrapper reproducing SovlerInitNet.forward(x).  Returns (N, p) f32."""
    N = x.shape[0]
    p, two_p = meta["p"], meta["two_p"]
    h_pad, p_pad = meta["h_pad"], meta["p_pad"]

    x2 = x.reshape(N, -1).astype(jnp.float32)             # flatten()
    assert x2.shape[1] == two_p, (x2.shape, two_p)

    cap = _vmem_capacity_bytes()
    budget = int(cap * 0.85)                               # headroom for Mosaic internals

    # ---- can the weights live fully resident in VMEM? ----
    w_elems = two_p * h_pad + h_pad * p_pad
    # Conservative footprint: bf16 weight blocks (assume double-buffered) +
    # their in-kernel f32 upcasts + per-row tiles (x/out double-buffered +
    # the squared intermediate).
    w_fixed = (2 * 2) * w_elems + 4 * w_elems
    per_row = 4 * (2 * two_p + 2 * p_pad + 2 * h_pad)

    tile_n_cap = min(_TILE_N_TARGET, _round_up(N, 8))
    fit_rows = (budget - w_fixed) // per_row if budget > w_fixed else 0
    tile_n_res = min(tile_n_cap, max(fit_rows, 0) // 8 * 8)
    use_resident = (not force_tiled) and tile_n_res >= 8

    if use_resident:
        tile_n = tile_n_res
        n_pad = _round_up(N, tile_n)
        x_p = x2 if n_pad == N else (
            jnp.zeros((n_pad, two_p), jnp.float32).at[:N].set(x2))

        vmem_need = w_fixed + tile_n * per_row
        vmem_limit = int(min(max(vmem_need + (4 << 20), 32 << 20), budget))

        flops = 2 * n_pad * two_p * h_pad + n_pad * h_pad + 2 * n_pad * h_pad * p_pad
        bytes_accessed = 4 * (x_p.size + n_pad * p_pad) + 2 * (w1t.size + w2t.size)

        out_pad = pl.pallas_call(
            _resident_kernel,
            out_shape=jax.ShapeDtypeStruct((n_pad, p_pad), jnp.float32),
            grid=(n_pad // tile_n,),
            in_specs=[
                pl.BlockSpec((tile_n, two_p), lambda i: (i, 0)),   # x tile
                pl.BlockSpec((two_p, h_pad), lambda i: (0, 0)),    # w1t, resident
                pl.BlockSpec((h_pad, p_pad), lambda i: (0, 0)),    # w2t, resident
            ],
            out_specs=pl.BlockSpec((tile_n, p_pad), lambda i: (i, 0)),
            compiler_params=pltpu.CompilerParams(
                dimension_semantics=("parallel",),
                vmem_limit_bytes=vmem_limit,
            ),
            cost_estimate=pl.CostEstimate(
                flops=flops, transcendentals=0, bytes_accessed=bytes_accessed),
        )(x_p, w1t, w2t)
        return out_pad[:N, :p]

    # ---- fallback for large p: hidden-tiled, reduction axis OUTER ----
    tile_n = min(_TILE_N_TARGET, _round_up(N, 8))
    n_pad = _round_up(N, tile_n)
    n_tiles = n_pad // tile_n
    acc_bytes = 4 * n_pad * p_pad
    # NOTE: for extremely large N the full (n_pad, p_pad) accumulator would
    # not fit VMEM either; batching over N in the wrapper would then be needed.

    def step_bytes(tile_h):
        return (2 * 4 * tile_n * two_p                 # x (2 bufs, f32)
                + (2 * 2 + 4) * two_p * tile_h         # w1 slab: bf16 x2 + f32 tmp
                + (2 * 2 + 4) * tile_h * p_pad         # w2 slab: bf16 x2 + f32 tmp
                + 2 * 4 * tile_n * tile_h              # h and h**2
                + 2 * 4 * tile_n * p_pad)              # out (2 bufs)

    # tile_h must divide h_pad (both multiples of 128); pick the largest that
    # fits the VMEM budget, up to the target.
    units = h_pad // 128
    tile_h = 128
    for d in range(1, units + 1):
        if units % d == 0:
            th = d * 128
            if th <= _TILE_H_TARGET and acc_bytes + step_bytes(th) <= budget:
                tile_h = th

    x_p = x2 if n_pad == N else (
        jnp.zeros((n_pad, two_p), jnp.float32).at[:N].set(x2))

    grid = (h_pad // tile_h, n_pad // tile_n)
    vmem_need = acc_bytes + step_bytes(tile_h)
    vmem_limit = int(min(max(vmem_need + (4 << 20), 32 << 20), budget))

    flops = 2 * n_pad * two_p * h_pad + n_pad * h_pad + 2 * n_pad * h_pad * p_pad
    bytes_accessed = (4 * (grid[0] * x_p.size + grid[0] * n_pad * p_pad)
                      + 2 * (w1t.size + w2t.size))

    out_pad = pl.pallas_call(
        _tiled_kernel,
        out_shape=jax.ShapeDtypeStruct((n_pad, p_pad), jnp.float32),
        grid=grid,
        in_specs=[
            pl.BlockSpec((tile_n, two_p), lambda k, i: (i, 0)),    # x tile
            pl.BlockSpec((two_p, tile_h), lambda k, i: (0, k)),    # w1t slab (fetched once)
            pl.BlockSpec((tile_h, p_pad), lambda k, i: (k, 0)),    # w2t slab (fetched once)
        ],
        out_specs=pl.BlockSpec((tile_n, p_pad), lambda k, i: (i, 0)),
        scratch_shapes=[pltpu.VMEM((n_tiles, tile_n, p_pad), jnp.float32)],
        compiler_params=pltpu.CompilerParams(
            dimension_semantics=("arbitrary", "arbitrary"),
            vmem_limit_bytes=vmem_limit,
        ),
        cost_estimate=pl.CostEstimate(
            flops=flops, transcendentals=0, bytes_accessed=bytes_accessed),
    )(x_p, w1t, w2t)
    return out_pad[:N, :p]


def _reference_forward(x, layer1, layer2):
    """Pure-JAX reference mirroring the PyTorch math exactly."""
    N = x.shape[0]
    xf = x.reshape(N, -1).astype(jnp.float32).T      # (2p, N)
    h = layer1 @ xf                                  # (hidden, N)
    h = h ** 2
    out = (layer2 @ h) / 2.0                         # (p, N)
    return out.T                                     # (N, p)


if __name__ == "__main__":
    p = 8
    layer1, layer2 = solver_init_params(p)
    w1t, w2t, meta = prepare_weights(layer1, layer2)   # one-time weight prep

    key = jax.random.PRNGKey(0)
    k1, k2 = jax.random.split(key)

    # Case 1: main (weights-resident) path.  Input (N, 2, p): flatten -> (N, 2p).
    N = 4
    x = jax.random.normal(k1, (N, 2, p), dtype=jnp.float32)
    out = jax.block_until_ready(solver_init_net_forward(x, w1t, w2t, meta))
    ref = _reference_forward(x, layer1, layer2)
    assert out.shape == (N, p), out.shape
    assert jnp.allclose(out, ref, atol=1e-4, rtol=1e-4), (
        f"resident path max abs err {jnp.max(jnp.abs(out - ref))}")

    # Case 2: force the hidden-tiled fallback path (used for very large p).
    N2 = 24
    x2 = jax.random.normal(k2, (N2, 2, p), dtype=jnp.float32)
    out2 = jax.block_until_ready(
        solver_init_net_forward(x2, w1t, w2t, meta, force_tiled=True))
    ref2 = _reference_forward(x2, layer1, layer2)
    assert out2.shape == (N2, p), out2.shape
    assert jnp.allclose(out2, ref2, atol=1e-4, rtol=1e-4), (
        f"tiled path max abs err {jnp.max(jnp.abs(out2 - ref2))}")

    print("KERNEL_OK")
</pallas_src>

<mosaic_0001>
module attributes {stable_mosaic.version = 11 : i64} {
  func.func @_resident_kernel(%arg0: i32, %arg1: memref<8x16xf32, #tpu.memory_space<vmem>>, %arg2: memref<16x128xbf16, #tpu.memory_space<vmem>>, %arg3: memref<128x128xbf16, #tpu.memory_space<vmem>>, %arg4: memref<8x128xf32, #tpu.memory_space<vmem>>) attributes {dimension_semantics = [#tpu.dimension_semantics<parallel>], iteration_bounds = array<i64: 1>, scalar_prefetch = 0 : i64, scratch_operands = 0 : i64, tpu.core_type = #tpu.core_type<tc>, window_params = [{transform_indices = @transform_0, window_bounds = array<i64: 8, 16>}, {pipeline_mode = #tpu.pipeline_mode<synchronous>, transform_indices = @transform_1, window_bounds = array<i64: 16, 128>}, {pipeline_mode = #tpu.pipeline_mode<synchronous>, transform_indices = @transform_2, window_bounds = array<i64: 128, 128>}, {transform_indices = @transform_3, window_bounds = array<i64: 8, 128>}]} {
    %c0 = arith.constant 0 : index
    %c0_0 = arith.constant 0 : index
    %0 = vector.load %arg2[%c0, %c0_0] : memref<16x128xbf16, #tpu.memory_space<vmem>>, vector<16x128xbf16>
    %1 = arith.extf %0 : vector<16x128xbf16> to vector<16x128xf32>
    %c0_1 = arith.constant 0 : index
    %c0_2 = arith.constant 0 : index
    %2 = vector.load %arg1[%c0_1, %c0_2] : memref<8x16xf32, #tpu.memory_space<vmem>>, vector<8x16xf32>
    %cst = arith.constant dense<0.000000e+00> : vector<8x128xf32>
    %3 = tpu.matmul %2, %1, %cst {dimension_numbers = #tpu.dot_dimension_numbers<[1], [0], [0], [1], [0, 0, 1, 1], [], []>} : vector<8x16xf32>, vector<16x128xf32>, vector<8x128xf32> -> vector<8x128xf32>
    %4 = arith.mulf %3, %3 : vector<8x128xf32>
    %c0_3 = arith.constant 0 : index
    %c0_4 = arith.constant 0 : index
    %5 = vector.load %arg3[%c0_3, %c0_4] : memref<128x128xbf16, #tpu.memory_space<vmem>>, vector<128x128xbf16>
    %6 = arith.extf %5 : vector<128x128xbf16> to vector<128x128xf32>
    %cst_5 = arith.constant dense<0.000000e+00> : vector<8x128xf32>
    %7 = tpu.matmul %4, %6, %cst_5 {dimension_numbers = #tpu.dot_dimension_numbers<[1], [0], [0], [1], [0, 0, 1, 1], [], []>} : vector<8x128xf32>, vector<128x128xf32>, vector<8x128xf32> -> vector<8x128xf32>
    %c0_6 = arith.constant 0 : index
    %c0_7 = arith.constant 0 : index
    %8 = vector.load %arg4[%c0_6, %c0_7] : memref<8x128xf32, #tpu.memory_space<vmem>>, vector<8x128xf32>
    tpu.vector_store %arg4[%c0_6, %c0_7], %7 {strides = array<i32>} : memref<8x128xf32, #tpu.memory_space<vmem>>, vector<8x128xf32>,
    return
  }
  func.func @transform_0(%arg0: i32) -> (i32, i32) {
    %c0_i32 = arith.constant 0 : i32
    %c0_i32_0 = arith.constant 0 : i32
    return %arg0, %c0_i32 : i32, i32
  }
  func.func @transform_1(%arg0: i32) -> (i32, i32) {
    %c0_i32 = arith.constant 0 : i32
    %c0_i32_0 = arith.constant 0 : i32
    %c0_i32_1 = arith.constant 0 : i32
    return %c0_i32, %c0_i32_0 : i32, i32
  }
  func.func @transform_2(%arg0: i32) -> (i32, i32) {
    %c0_i32 = arith.constant 0 : i32
    %c0_i32_0 = arith.constant 0 : i32
    %c0_i32_1 = arith.constant 0 : i32
    return %c0_i32, %c0_i32_0 : i32, i32
  }
  func.func @transform_3(%arg0: i32) -> (i32, i32) {
    %c0_i32 = arith.constant 0 : i32
    %c0_i32_0 = arith.constant 0 : i32
    return %arg0, %c0_i32 : i32, i32
  }
}

</mosaic_0001>

<bundles_post_ra>
// kernel: tpu_custom_call.1
= control target key start
LH: loop header
LB: loop body
LE: loop exit
PB: predicated region body
PF: predicated region fallthrough
CT: control target
= control target key end

     0   :  { %8 = vsyncpa [#allocation3], 0  ;;  %s572_s0 = inlined_call_operand.hbm [shape: f32[8,16], index: 0, kind: input, shape index: {}]   ;;  %s573_s1 = inlined_call_operand.hbm [shape: bf16[16,128], index: 1, kind: input, shape index: {}]   ;;  %s574_s2 = inlined_call_operand.hbm [shape: bf16[128,128], index: 2, kind: input, shape index: {}]   ;;  %s575_s3 = inlined_call_operand.hbm [shape: f32[8,128], index: 3, kind: output, shape index: {}]  }
   0x1   :  { %9 = vsyncpa [#allocation6], 0 }
   0x2   :  { %10 = vsyncpa [#allocation4], 0  ;;  %s489_s12 = smov [#allocation5]   ;;  %s395_s16 = scalar_lea.hbm %s573_s1, 128 }
   0x3   :  { %s26_s13 = sshll.u32 %s489_s12, 4  ;;  %p396_p0 = scmp.ne.s32.totalorder %s573_s1, %s395_s16  ;;  %s27_s13 = int_to_ptr.vmem [resolvable:$true] %s26_s13 }
   0x4   :  { %p399_p1 = scmp.lt.u32.totalorder %s395_s16, %s573_s1 }
   0x6   :  { %p401_p2 = pnand %p399_p1, %p396_p0 }
   0x8   :  { %404 = shalt.err (!%p401_p2)
}
   0x9   :  { %s405_s21 = scalar_lea.vmem %s27_s13, 128  ;;  %p410_p4 = scmp.lt.s32.totalorder %s27_s13, %s27_s13 }
   0xa   :  { %p406_p3 = scmp.ne.s32.totalorder %s27_s13, %s405_s21  ;;  %p411_p5 = scmp.lt.s32.totalorder %s405_s21, %s405_s21 }
   0xc   :  { %p412_p6 = por %p411_p5, %p410_p4 }
   0xe   :  { %p413_p7 = pnand %p412_p6, %p406_p3 }
  0x10   :  { %416 = shalt.err (!%p413_p7)
}
  0x11   :  { %s490_s22 = smov 64   ;;  %s491_s23 = smov 4  }
  0x12   :  { %32 = dma.hbm_to_vmem [thread:$0]  %s573_s1, 128, %s27_s13, [#allocation6], %s490_s22, %s490_s22, %s491_s23  }
  0x13   :  { %s492_s26 = smov [#allocation2]   ;;  %s493_s28 = smov [#allocation7]  }
  0x14   :  { %s17_s27 = sshll.u32 %s492_s26, 4  ;;  %s38_s29 = sshll.u32 %s493_s28, 4  ;;  %s18_s27 = int_to_ptr.vmem [resolvable:$true] %s17_s27  ;;  %s39_s29 = int_to_ptr.vmem [resolvable:$true] %s38_s29 }
  0x15   :  { %s417_s5 = scalar_lea.hbm %s572_s0, 128 }
  0x16   :  { %p418_p8 = scmp.ne.s32.totalorder %s572_s0, %s417_s5  ;;  %p421_p9 = scmp.lt.u32.totalorder %s417_s5, %s572_s0 }
  0x18   :  { %p423_p10 = pnand %p421_p9, %p418_p8 }
  0x1a   :  { %426 = shalt.err (!%p423_p10)
}
  0x1b   :  { %s427_s1 = scalar_lea.vmem %s18_s27, 128  ;;  %p432_p12 = scmp.lt.s32.totalorder %s18_s27, %s18_s27 }
  0x1c   :  { %p428_p11 = scmp.ne.s32.totalorder %s18_s27, %s427_s1  ;;  %p433_p13 = scmp.lt.s32.totalorder %s427_s1, %s427_s1 }
  0x1e   :  { %p434_p0 = por %p433_p13, %p432_p12 }
  0x20   :  { %p435_p1 = pnand %p434_p0, %p428_p11 }
  0x22   :  { %438 = shalt.err (!%p435_p1)
}
  0x23   :  { %20 = dma.hbm_to_vmem [thread:$0]  %s572_s0, 128, %s18_s27, [#allocation3]  }
  0x24   :  { %s439_s14 = scalar_lea.hbm %s574_s2, 1024 }
  0x25   :  { %p440_p2 = scmp.ne.s32.totalorder %s574_s2, %s439_s14  ;;  %p443_p3 = scmp.lt.u32.totalorder %s439_s14, %s574_s2 }
  0x27   :  { %p445_p4 = pnand %p443_p3, %p440_p2 }
  0x29   :  { %448 = shalt.err (!%p445_p4)
}
  0x2a   :  { %s449_s19 = scalar_lea.vmem %s39_s29, 1024  ;;  %p454_p6 = scmp.lt.s32.totalorder %s39_s29, %s39_s29 }
  0x2b   :  { %p450_p5 = scmp.ne.s32.totalorder %s39_s29, %s449_s19  ;;  %p455_p7 = scmp.lt.s32.totalorder %s449_s19, %s449_s19 }
  0x2d   :  { %p456_p8 = por %p455_p7, %p454_p6 }
  0x2f   :  { %p457_p9 = pnand %p456_p8, %p450_p5 }
  0x31   :  { %460 = shalt.err (!%p457_p9)
}
  0x32   :  { %44 = dma.hbm_to_vmem [thread:$0]  %s574_s2, 1024, %s39_s29, [#allocation6], %s490_s22, %s490_s22, %s491_s23  }
  0x33   :  { %483 = dma.done.wait [#allocation3], 128  }
  0x34   :  { %484 = vsyncadd [#allocation3], 4294967168 }
  0x35   :  { %485 = dma.done.wait [#allocation6], 1152  }
  0x36   :  { %486 = vsyncadd [#allocation6], 4294966144  ;;  %v494_v0 = vmov 0.0|0.0   ;;  %vm495_vm0 = vmmov 0   ;;  %v496_v1 = vmov 0.0   ;;  %v255_v2 = vld [vmem:[#allocation5] sm:$0xff]  }
  0x37   :  { %359 = vmatprep.subr.bf16.mxu0 %v494_v0  ;;  %321 = vmatprep.mubr.msk.f32.mxu0 %vm495_vm0, %v496_v1  ;;  %v259_v3 = vld [vmem:[#allocation7] sm:$0xff]   ;;  %v58_v4 = vld [vmem:[#allocation2] sm:$0xff]  ;;  %vm59_vm1 = vcmask 130048   ;;  %v290_v5 = vld [vmem:[#allocation7 + $0x8] sm:$0xff]   ;;  %s497_s2 = smov [#allocation8]  }
  0x38   :  { %362 = vmatprep.subr.bf16.mxu1 %v494_v0  ;;  %356 = vmatprep.mubr.msk.f32.mxu1 %vm495_vm0, %v496_v1  ;;  %v291_v6 = vld [vmem:[#allocation7 + $0x10] sm:$0xff]   ;;  %v292_v7 = vld [vmem:[#allocation7 + $0x18] sm:$0xff]   ;;  %v293_v8 = vld [vmem:[#allocation7 + $0x20] sm:$0xff]   ;;  %s243_s21 = sshll.u32 %s497_s2, 4  ;;  %s244_s21 = int_to_ptr.vmem [resolvable:$true] %s243_s21 }
  0x39   :  { %361 = vmatpush3.bf16.msra.mxu0 %v255_v2  ;;  %364 = vmatpush3.bf16.msra.mxu1 %v259_v3  ;;  %v294_v9 = vld [vmem:[#allocation7 + $0x28] sm:$0xff]   ;;  %v295_v10 = vld [vmem:[#allocation7 + $0x30] sm:$0xff]   ;;  %v296_v11 = vld [vmem:[#allocation7 + $0x38] sm:$0xff]   ;;  %s461_s22 = scalar_lea.vmem %s244_s21, 128  ;;  %p466_p11 = scmp.lt.s32.totalorder %s244_s21, %s244_s21 }
  0x3a   :  { %365 = vmatprep.subr.bf16.mxu1 %v494_v0  ;;  %p462_p10 = scmp.ne.s32.totalorder %s244_s21, %s461_s22  ;;  %p467_p12 = scmp.lt.s32.totalorder %s461_s22, %s461_s22 }
  0x3c   :  { %322 = vmatmul.mubr.msk.f32.vlgmr.msra.gmra.mrb[0].mxu0 %vm59_vm1, %v58_v4  ;;  %p468_p13 = por %p467_p12, %p466_p11 }
  0x3d   :  { %367 = vmatpush3.bf16.msra.mxu1 %v290_v5 }
  0x3e   :  { %368 = vmatprep.subr.bf16.mxu1 %v494_v0  ;;  %p469_p0 = pnand %p468_p13, %p462_p10 }
  0x41   :  { %370 = vmatpush3.bf16.msra.mxu1 %v291_v6 }
  0x42   :  { %371 = vmatprep.subr.bf16.mxu1 %v494_v0 }
  0x45   :  { %373 = vmatpush3.bf16.msra.mxu1 %v292_v7 }
  0x46   :  { %374 = vmatprep.subr.bf16.mxu1 %v494_v0 }
  0x49   :  { %376 = vmatpush3.bf16.msra.mxu1 %v293_v8 }
  0x4a   :  { %377 = vmatprep.subr.bf16.mxu1 %v494_v0 }
  0x4d   :  { %379 = vmatpush3.bf16.msra.mxu1 %v294_v9 }
  0x4e   :  { %380 = vmatprep.subr.bf16.mxu1 %v494_v0 }
  0x51   :  { %382 = vmatpush3.bf16.msra.mxu1 %v295_v10 }
  0x52   :  { %383 = vmatprep.subr.bf16.mxu1 %v494_v0 }
  0x55   :  { %385 = vmatpush3.bf16.msra.mxu1 %v296_v11 }
 0x10f   :  { %v129_v12 = vpop.f32.mrb[0].mxu0 }
 0x110   :  { %v133_v13 = vmul.f32 %v129_v12, %v129_v12  ;;  %v323_v14 = vpop.f32.mrb[1].mxu0 }
 0x112   :  { %357 = vmatmul.mubr.f32.vlgmr.msra.gmra.mrb[0].mxu1 %v133_v13 }
 0x1e5   :  { %v232_v15 = vpop.f32.mrb[0].mxu1 }
 0x1e6   :  { %236 = vst [vmem:[#allocation8] sm:$0xff] %v232_v15  ;;  %v358_v16 = vpop.f32.mrb[1].mxu1 }
 0x1e7   :  { %472 = shalt.err (!%p469_p0)
}
 0x1e8   :  { %s473_s25 = scalar_lea.hbm %s575_s3, 128 }
 0x1e9   :  { %p474_p1 = scmp.ne.s32.totalorder %s575_s3, %s473_s25  ;;  %p477_p2 = scmp.lt.u32.totalorder %s473_s25, %s575_s3 }
 0x1eb   :  { %p479_p3 = pnand %p477_p2, %p474_p1 }
 0x1ed   :  { %482 = shalt.err (!%p479_p3)
}
 0x1ee   :  { %246 = dma.vmem_to_hbm [thread:$0]  %s244_s21, 128, %s575_s3, [#allocation4]  }
 0x1ef   :  { %487 = dma.done.wait [#allocation4], 128  }
 0x1f0   :  { %488 = vsyncadd [#allocation4], 4294967168 }
 0x1f1   :  { %250 = vsyncpa [#allocation3], 1 }
 0x1f2   :  { %251 = vsyncpa [#allocation6], 1 }
 0x1f3   :  { %252 = vsyncpa [#allocation4], 1 }

</bundles_post_ra>
